<compile_context>
chip_gen: v6e
topology: v6e:2x2x1
jax: 0.10.0
libtpu: 0.0.40
codegen_flags: <defaults>
</compile_context>

<pallas_src>
import math
import functools

import jax
import jax.numpy as jnp
from jax.experimental import pallas as pl
from jax.experimental.pallas import tpu as pltpu


def _round_up(x, m):
    return (x + m - 1) // m * m


def _hash_bits_u32(idx_i32, seed_i32):
    """lowbias32-style avalanche hash of (element index, seed) -> uint32 bits."""
    x = idx_i32.astype(jnp.uint32)
    s = seed_i32.astype(jnp.uint32)
    x = x ^ (s * jnp.uint32(2654435769))          # spread seed bits (golden ratio)
    x = x ^ (x >> 16)
    x = x * jnp.uint32(0x7FEB352D)
    x = x ^ (x >> 15)
    x = x * jnp.uint32(0x846CA68B)
    x = x ^ (x >> 16)
    return x


def _pe_kernel(seed_ref, x_ref, pe_ref, o_ref, *, block_rows, batch, p, training):
    # 3-D path : x_ref (block_s, B, D), pe_ref (block_s, 1, D) -> broadcast add.
    # flat path: x_ref (block_s, B*D), pe_ref (block_s, D)     -> lane-tile PE.
    x = x_ref[...]
    pe = pe_ref[...]
    if x.ndim == 3:
        y = x + pe                                        # sublane broadcast over batch
    else:
        if batch > 1:
            pe = jnp.concatenate([pe] * batch, axis=-1)   # tiny PE tile -> (bs, B*D)
        y = x + pe

    if training and 0.0 < p < 1.0:
        # Inverted dropout with a stateless hash PRNG keyed on the *global*
        # element index, so every block (and every seed) gets its own mask.
        row_off = pl.program_id(0) * block_rows
        idx = jax.lax.broadcasted_iota(jnp.int32, y.shape, 0) + row_off
        for ax in range(1, y.ndim):
            idx = idx * y.shape[ax] + jax.lax.broadcasted_iota(jnp.int32, y.shape, ax)
        bits = _hash_bits_u32(idx, seed_ref[0])
        bits31 = (bits >> 1).astype(jnp.int32)            # uniform in [0, 2^31)
        thresh = min(int(p * 2147483648.0), 2147483647)
        keep = bits31 >= thresh                           # P(keep) = 1 - p (to 2^-31)
        scale = jnp.asarray(1.0 / (1.0 - p), dtype=y.dtype)
        y = jnp.where(keep, y * scale, jnp.zeros_like(y))

    o_ref[...] = y.astype(o_ref.dtype)


def make_sinusoidal_pe(max_len, d_model):
    """Same construction as the PyTorch __init__ (returns (max_len, 1, d_model))."""
    position = jnp.arange(max_len, dtype=jnp.float32)[:, None]
    div_term = jnp.exp(
        jnp.arange(0, d_model, 2, dtype=jnp.float32) * (-math.log(10000.0) / d_model)
    )
    ang = position * div_term
    pe = jnp.zeros((max_len, d_model), dtype=jnp.float32)
    pe = pe.at[:, 0::2].set(jnp.sin(ang))
    pe = pe.at[:, 1::2].set(jnp.cos(ang))
    return pe[:, None, :]


def _choose_block_s(S, row_vmem_bytes, *, min_tile=1 << 20, target_tile=4 << 20):
    """Sequence-block size for a streaming elementwise kernel.

    Tile-byte floor first (>=1 MiB, target 4 MiB) so the ~0.35 us/step pipeline
    overhead is amortized; only then split into >=2 (preferably an even number
    of) blocks so both v7x TensorCores get equal work.  Small arrays -> one block.
    """
    total = S * row_vmem_bytes
    if total <= 2 * min_tile:
        return S                                          # grid=(1,)
    tgt_rows = max(8, (target_tile // max(row_vmem_bytes, 1)) // 8 * 8)
    bs = max(8, min(tgt_rows, (S // 2) // 8 * 8))         # >=2 blocks, x8 rows
    n = -(-S // bs)
    if n % 2 == 1 and n > 1:                              # prefer an even grid length
        bs_even = max(8, (-(-S // (n + 1)) + 7) // 8 * 8)
        if bs_even * row_vmem_bytes >= min_tile:
            bs = bs_even
    return min(bs, S)


def positional_encoding(x, pe, *, p=0.1, training=False, seed=0, block_s=None,
                        donate=False):
    """x: (S, B, D).  pe: (max_len, 1, D).  Returns (S, B, D) in x.dtype."""
    S, B, D = x.shape
    assert pe.shape[0] >= S and pe.shape[-1] == D

    if training and p >= 1.0:
        # nn.Dropout(p>=1) zeroes everything: skip reading x entirely.
        return jnp.zeros_like(x)

    itemsize = x.dtype.itemsize
    sub = max(8, 32 // itemsize)                          # sublane tile height

    use_3d = (D % 128 == 0)
    if use_3d:
        # Lane dim = D (full-width vst); PE broadcasts over batch via sublanes.
        x_in = x
        pe_in = pe[:S].reshape(S, 1, D).astype(x.dtype)
        row_vmem = _round_up(B, sub) * D * itemsize       # padded VMEM bytes / row
        pe_row_vmem = sub * D * itemsize
        x_block = lambda bs: (bs, B, D)
        pe_block = lambda bs: (bs, 1, D)
        idx_map = lambda i: (i, 0, 0)
    else:
        # Flatten for lane density (free contiguous reshape); PE lane-tiled in-kernel.
        x_in = x.reshape(S, B * D)
        pe_in = pe[:S].reshape(S, D).astype(x.dtype)
        row_vmem = _round_up(B * D, 128) * itemsize
        pe_row_vmem = _round_up(D, 128) * itemsize
        x_block = lambda bs: (bs, B * D)
        pe_block = lambda bs: (bs, D)
        idx_map = lambda i: (i, 0)

    if block_s is None:
        block_s = _choose_block_s(S, row_vmem)
    block_s = min(int(block_s), S)
    if (not use_3d) and block_s < S:
        block_s = max(8, (block_s // 8) * 8)              # keep full sublanes / full vst
    grid = (pl.cdiv(S, block_s),)                         # padded last block is OK

    # Scoped-VMEM limit sized to the real footprint: 2 buffers each for x, out, pe
    # plus slack.  Keeps v5e (16 MiB default scoped) happy and stays well under
    # v7x's 64 MiB-per-TensorCore physical VMEM.
    footprint = 2 * block_s * (2 * row_vmem + pe_row_vmem) + (4 << 20)
    vmem_limit = int(min(max(footprint, 32 << 20), 48 << 20))

    seed_arr = jnp.array([seed], dtype=jnp.int32)
    kernel = functools.partial(_pe_kernel, block_rows=block_s, batch=B,
                               p=float(p), training=bool(training))

    out = pl.pallas_call(
        kernel,
        out_shape=jax.ShapeDtypeStruct(x_in.shape, x.dtype),
        grid=grid,
        in_specs=[
            pl.BlockSpec(memory_space=pltpu.MemorySpace.SMEM),   # seed scalar
            pl.BlockSpec(x_block(block_s), idx_map),
            pl.BlockSpec(pe_block(block_s), idx_map),
        ],
        out_specs=pl.BlockSpec(x_block(block_s), idx_map),
        compiler_params=pltpu.CompilerParams(
            dimension_semantics=("parallel",),
            vmem_limit_bytes=vmem_limit,
        ),
        input_output_aliases=({1: 0} if donate else {}),
    )(seed_arr, x_in, pe_in)

    return out.reshape(S, B, D)


if __name__ == "__main__":
    # Small demo consistent with the module forward: x is (seq, batch, d_model).
    S, B, D = 8, 2, 32
    pe = make_sinusoidal_pe(64, D)
    x = jax.random.normal(jax.random.PRNGKey(0), (S, B, D), dtype=jnp.float32)
    out = jax.block_until_ready(positional_encoding(x, pe, p=0.1, training=False))
    assert out.shape == (S, B, D)
    assert jnp.allclose(out, x + pe[:S], atol=1e-6, rtol=1e-6), "eval mismatch (small)"

    # Flat (S, B*D) lane-dense path: D not a multiple of 128, B*D == 128.
    S1, B1, D1 = 64, 2, 64
    pe1 = make_sinusoidal_pe(128, D1)
    x1 = jax.random.normal(jax.random.PRNGKey(1), (S1, B1, D1), dtype=jnp.float32)
    out1 = jax.block_until_ready(positional_encoding(x1, pe1, training=False))
    assert jnp.allclose(out1, x1 + pe1[:S1], atol=1e-6, rtol=1e-6), "eval mismatch (flat)"

    # 3-D sublane-broadcast path (D % 128 == 0), single-block grid.
    S2, B2, D2 = 256, 4, 128
    pe2 = make_sinusoidal_pe(512, D2)
    x2 = jax.random.normal(jax.random.PRNGKey(2), (S2, B2, D2), dtype=jnp.float32)
    ref2 = x2 + pe2[:S2]
    out2 = jax.block_until_ready(positional_encoding(x2, pe2, training=False))
    assert jnp.allclose(out2, ref2, atol=1e-5, rtol=1e-5), "eval mismatch (3d)"

    # Multi-block grid with a padded (non-divisible) last block.
    out2b = jax.block_until_ready(
        positional_encoding(x2, pe2, training=False, block_s=48))
    assert jnp.allclose(out2b, ref2, atol=1e-5, rtol=1e-5), "eval mismatch (padded grid)"

    # Training mode: inverted-dropout semantics (keep prob 1-p, scale 1/(1-p)).
    p = 0.1
    out_tr = jax.block_until_ready(
        positional_encoding(x2, pe2, p=p, training=True, seed=42))
    drop_frac = float(jnp.mean((out_tr == 0.0).astype(jnp.float32)))
    assert 0.05 < drop_frac < 0.2, f"unexpected dropout fraction {drop_frac}"
    kept = out_tr != 0.0
    assert jnp.allclose(jnp.where(kept, out_tr, 0.0),
                        jnp.where(kept, ref2 / (1.0 - p), 0.0),
                        atol=1e-5, rtol=1e-5), "kept values not scaled by 1/(1-p)"

    print("KERNEL_OK")
</pallas_src>

<mosaic_0001>
module attributes {stable_mosaic.version = 11 : i64} {
  func.func @_pe_kernel(%arg0: i32, %arg1: memref<1xi32, #tpu.memory_space<smem>>, %arg2: memref<8x64xf32, #tpu.memory_space<vmem>>, %arg3: memref<8x32xf32, #tpu.memory_space<vmem>>, %arg4: memref<8x64xf32, #tpu.memory_space<vmem>>) attributes {dimension_semantics = [#tpu.dimension_semantics<parallel>], iteration_bounds = array<i64: 1>, scalar_prefetch = 0 : i64, scratch_operands = 0 : i64, tpu.core_type = #tpu.core_type<tc>, window_params = [{transform_indices = @transform_0, window_bounds = array<i64: 1>}, {transform_indices = @transform_1, window_bounds = array<i64: 8, 64>}, {transform_indices = @transform_2, window_bounds = array<i64: 8, 32>}, {transform_indices = @transform_3, window_bounds = array<i64: 8, 64>}]} {
    %c0 = arith.constant 0 : index
    %c0_0 = arith.constant 0 : index
    %0 = vector.load %arg2[%c0, %c0_0] : memref<8x64xf32, #tpu.memory_space<vmem>>, vector<8x64xf32>
    %c0_1 = arith.constant 0 : index
    %c0_2 = arith.constant 0 : index
    %1 = vector.load %arg3[%c0_1, %c0_2] : memref<8x32xf32, #tpu.memory_space<vmem>>, vector<8x32xf32>
    %2 = tpu.concatenate %1, %1 in 1 : vector<8x32xf32>, vector<8x32xf32> -> vector<8x64xf32>
    %3 = arith.addf %0, %2 : vector<8x64xf32>
    %c0_3 = arith.constant 0 : index
    %c0_4 = arith.constant 0 : index
    %4 = vector.load %arg4[%c0_3, %c0_4] : memref<8x64xf32, #tpu.memory_space<vmem>>, vector<8x64xf32>
    tpu.vector_store %arg4[%c0_3, %c0_4], %3 {strides = array<i32>} : memref<8x64xf32, #tpu.memory_space<vmem>>, vector<8x64xf32>,
    return
  }
  func.func @transform_0(%arg0: i32) -> i32 {
    %c0_i32 = arith.constant 0 : i32
    %c0_i32_0 = arith.constant 0 : i32
    return %c0_i32 : i32
  }
  func.func @transform_1(%arg0: i32) -> (i32, i32) {
    %c0_i32 = arith.constant 0 : i32
    %c0_i32_0 = arith.constant 0 : i32
    return %arg0, %c0_i32 : i32, i32
  }
  func.func @transform_2(%arg0: i32) -> (i32, i32) {
    %c0_i32 = arith.constant 0 : i32
    %c0_i32_0 = arith.constant 0 : i32
    return %arg0, %c0_i32 : i32, i32
  }
  func.func @transform_3(%arg0: i32) -> (i32, i32) {
    %c0_i32 = arith.constant 0 : i32
    %c0_i32_0 = arith.constant 0 : i32
    return %arg0, %c0_i32 : i32, i32
  }
}

</mosaic_0001>

<bundles_post_ra>
// kernel: tpu_custom_call.1
= control target key start
LH: loop header
LB: loop body
LE: loop exit
PB: predicated region body
PF: predicated region fallthrough
CT: control target
= control target key end

     0   :  { %9 = vsyncpa [#allocation4], 0  ;;  %s170_s0 = inlined_call_operand.<no memory space> [shape: s32[1], index: 0, kind: input, shape index: {}]   ;;  %s171_s1 = inlined_call_operand.hbm [shape: f32[8,64], index: 1, kind: input, shape index: {}]   ;;  %s172_s2 = inlined_call_operand.hbm [shape: f32[8,32], index: 2, kind: input, shape index: {}]   ;;  %s173_s3 = inlined_call_operand.hbm [shape: f32[8,64], index: 3, kind: output, shape index: {}]  }
   0x1   :  { %10 = vsyncpa [#allocation7], 0 }
   0x2   :  { %11 = vsyncpa [#allocation5], 0  ;;  %s137_s12 = smov [#allocation3]   ;;  %s138_s14 = smov [#allocation6]  }
   0x3   :  { %s20_s13 = sshll.u32 %s137_s12, 4  ;;  %s30_s15 = sshll.u32 %s138_s14, 4  ;;  %s21_s13 = int_to_ptr.vmem [resolvable:$true] %s20_s13  ;;  %s31_s15 = int_to_ptr.vmem [resolvable:$true] %s30_s15 }
   0x4   :  { %s79_s16 = scalar_lea.vmem %s21_s13, 128  ;;  %p84_p1 = scmp.lt.s32.totalorder %s21_s13, %s21_s13 }
   0x5   :  { %p80_p0 = scmp.ne.s32.totalorder %s21_s13, %s79_s16  ;;  %p85_p2 = scmp.lt.s32.totalorder %s79_s16, %s79_s16 }
   0x7   :  { %p86_p3 = por %p85_p2, %p84_p1 }
   0x9   :  { %p87_p4 = pnand %p86_p3, %p80_p0 }
   0xb   :  { %90 = shalt.err (!%p87_p4)
}
   0xc   :  { %23 = dma.hbm_to_vmem [thread:$0]  %s171_s1, 128, %s21_s13, [#allocation4]  }
   0xd   :  { %s99_s18 = scalar_lea.vmem %s31_s15, 128  ;;  %p104_p6 = scmp.lt.s32.totalorder %s31_s15, %s31_s15 }
   0xe   :  { %p100_p5 = scmp.ne.s32.totalorder %s31_s15, %s99_s18  ;;  %p105_p7 = scmp.lt.s32.totalorder %s99_s18, %s99_s18 }
  0x10   :  { %p106_p8 = por %p105_p7, %p104_p6 }
  0x12   :  { %p107_p9 = pnand %p106_p8, %p100_p5 }
  0x14   :  { %110 = shalt.err (!%p107_p9)
}
  0x15   :  { %33 = dma.hbm_to_vmem [thread:$0]  %s172_s2, 128, %s31_s15, [#allocation7]  }
  0x16   :  { %131 = dma.done.wait [#allocation4], 128  }
  0x17   :  { %132 = vsyncadd [#allocation4], 4294967168 }
  0x18   :  { %133 = dma.done.wait [#allocation7], 128  }
  0x19   :  { %134 = vsyncadd [#allocation7], 4294967168  ;;  %v41_v0 = vld [vmem:[#allocation6] sm:$0xff]  ;;  %s139_s21 = smov 32   ;;  %vm46_vm0 = vcmask 261120   ;;  %v40_v1 = vld [vmem:[#allocation3] sm:$0xff] }
  0x1a   :  { %43 = vrot.lane.b32.xlu0 %v41_v0, %s139_s21  ;;  %s140_s1 = smov [#allocation8]   ;;  %vm49_vm1 = vcmask 523264  }
  0x1b   :  { %s57_s22 = sshll.u32 %s140_s1, 4  ;;  %s58_s22 = int_to_ptr.vmem [resolvable:$true] %s57_s22 }
  0x1c   :  { %s111_s23 = scalar_lea.vmem %s58_s22, 128  ;;  %p116_p11 = scmp.lt.s32.totalorder %s58_s22, %s58_s22 }
  0x1d   :  { %p112_p10 = scmp.ne.s32.totalorder %s58_s22, %s111_s23  ;;  %p117_p12 = scmp.lt.s32.totalorder %s111_s23, %s111_s23 }
  0x1f   :  { %p118_p13 = por %p117_p12, %p116_p11 }
  0x21   :  { %p119_p0 = pnand %p118_p13, %p112_p10 }
  0x8c   :  { %v44_v2 = vpop.permute.xlu0 %43 }
  0x8d   :  { %v47_v3 = vsel %vm46_vm0, %v41_v0, %v44_v2 }
  0x8e   :  { %v48_v4 = vadd.f32 %v47_v3, %v40_v1 }
  0x90   :  { %50 = vst.msk [vmem:[#allocation8] sm:$0xff] %vm49_vm1, %v48_v4 }
  0x91   :  { %122 = shalt.err (!%p119_p0)
}
  0x92   :  { %60 = dma.vmem_to_hbm [thread:$0]  %s58_s22, 128, %s173_s3, [#allocation5]  }
  0x93   :  { %135 = dma.done.wait [#allocation5], 128  }
  0x94   :  { %136 = vsyncadd [#allocation5], 4294967168 }
  0x95   :  { %64 = vsyncpa [#allocation4], 1 }
  0x96   :  { %65 = vsyncpa [#allocation7], 1 }
  0x97   :  { %66 = vsyncpa [#allocation5], 1 }

</bundles_post_ra>
